<compile_context>
chip_gen: v6e
topology: v6e:2x2x1
jax: 0.10.0
libtpu: 0.0.40
codegen_flags: <defaults>
</compile_context>

<pallas_src>
import functools

import jax
import jax.numpy as jnp
from jax.experimental import pallas as pl
from jax.experimental.pallas import tpu as pltpu


def _se_block_kernel(x_ref, w1t_ref, b1_ref, w2t_ref, b2_ref, o_ref, *, inv_n):
    # x block: (Bt, C, Np) -> Bt batch elements, channels on sublanes,
    # (padded) spatial positions on the fast lane axis.
    x = x_ref[...].astype(jnp.float32)                                # [Bt, C, Np]

    # --- Squeeze: global average pool over H*W (lane reduction). ---
    # Padded lanes are zero, so the sum equals the true-N sum; divide by the
    # true pixel count.
    pooled = jnp.sum(x, axis=-1) * inv_n                              # [Bt, C]

    # --- Excitation (batched over the block): fc1 -> ReLU -> fc2 -> sigmoid.
    h = jnp.dot(pooled, w1t_ref[...],
                preferred_element_type=jnp.float32) + b1_ref[...]     # [Bt, Cr]
    h = jnp.maximum(h, 0.0)
    s = jnp.dot(h, w2t_ref[...],
                preferred_element_type=jnp.float32) + b2_ref[...]     # [Bt, C]

    # Numerically stable, exact sigmoid: exp on the EUP, exact divide.
    e = jnp.exp(-jnp.abs(s))
    scale = jnp.where(s >= 0.0, 1.0 / (1.0 + e), e / (1.0 + e))       # [Bt, C]

    # --- Scale: per-(batch, channel) gate broadcast over the lanes. ---
    o_ref[...] = (x * scale[:, :, None]).astype(o_ref.dtype)


def se_block_pallas(x_nchw, w1, b1, w2, b2):
    """SEBlock forward.

    x_nchw: [B, C, H, W]
    w1: [C//r, C]  b1: [C//r]   (fc1, PyTorch [out, in] layout)
    w2: [C, C//r]  b2: [C]      (fc2)
    """
    B, C, H, W = x_nchw.shape
    N = H * W
    Cr = w1.shape[0]
    dtype = x_nchw.dtype

    # NCHW -> [B, C, N] is a pure reshape (same memory layout).
    x_flat = x_nchw.reshape(B, C, N)

    # Guarantee a lane-dense (multiple-of-128) last axis.
    Np = ((N + 127) // 128) * 128
    if Np != N:
        x_flat = jnp.pad(x_flat, ((0, 0), (0, 0), (0, Np - N)))

    # Host-side prep (tiny, one-off): transpose weights so the kernel does
    # row-vector matmuls with no in-kernel transposes; f32 biases as rows.
    w1_t = jnp.asarray(w1, jnp.float32).T                 # [C, Cr]
    w2_t = jnp.asarray(w2, jnp.float32).T                 # [Cr, C]
    b1_r = jnp.asarray(b1, jnp.float32).reshape(1, Cr)
    b2_r = jnp.asarray(b2, jnp.float32).reshape(1, C)

    # --- Pick the batch-block size Bt. ---
    itembytes = x_flat.dtype.itemsize
    per_b_bytes = C * Np * itembytes
    # Double-buffered input + output blocks must stay under this budget
    # (conservative for v7x's 64 MiB physical VMEM; weights are tiny).
    vmem_block_budget = 24 * 1024 * 1024
    max_bt_vmem = max(1, vmem_block_budget // (4 * per_b_bytes))
    # ~1 MiB per block already hides the per-grid-step overhead.
    target_bt = max(1, (1 << 20) // per_b_bytes)
    bt_cap = int(min(B, max_bt_vmem, target_bt))
    if B >= 2:
        # Keep at least 2 grid steps so both v7x TensorCores get a shard.
        bt_cap = max(1, min(bt_cap, B // 2))
    bt = 1
    for d in range(1, bt_cap + 1):
        if B % d == 0:
            bt = d
    grid = (B // bt,)

    kernel = functools.partial(_se_block_kernel, inv_n=1.0 / N)

    out_flat = pl.pallas_call(
        kernel,
        out_shape=jax.ShapeDtypeStruct((B, C, Np), dtype),
        grid_spec=pltpu.PrefetchScalarGridSpec(
            num_scalar_prefetch=0,
            grid=grid,
            in_specs=[
                pl.BlockSpec((bt, C, Np), lambda i: (i, 0, 0)),   # x
                pl.BlockSpec((C, Cr), lambda i: (0, 0)),          # fc1 weight^T
                pl.BlockSpec((1, Cr), lambda i: (0, 0)),          # fc1 bias
                pl.BlockSpec((Cr, C), lambda i: (0, 0)),          # fc2 weight^T
                pl.BlockSpec((1, C), lambda i: (0, 0)),           # fc2 bias
            ],
            out_specs=pl.BlockSpec((bt, C, Np), lambda i: (i, 0, 0)),
        ),
        compiler_params=pltpu.CompilerParams(
            dimension_semantics=("parallel",),
            vmem_limit_bytes=48 * 1024 * 1024,
        ),
    )(x_flat, w1_t, b1_r, w2_t, b2_r)

    # Drop lane padding (if any) and restore NCHW (free reshape).
    if Np != N:
        out_flat = out_flat[..., :N]
    return out_flat.reshape(B, C, H, W)


def _reference(x_nchw, w1, b1, w2, b2):
    pooled = jnp.mean(x_nchw, axis=(2, 3))                 # [B, C]
    h = jnp.maximum(pooled @ w1.T + b1, 0.0)               # [B, C//r]
    s = jax.nn.sigmoid(h @ w2.T + b2)                      # [B, C]
    return x_nchw * s[:, :, None, None]


if __name__ == "__main__":
    key = jax.random.PRNGKey(0)
    # in_channels must be >= reduction (=16) so C // reduction >= 1.
    B, C, H, W = 2, 32, 16, 16
    reduction = 16
    Cr = C // reduction

    k0, k1, k2, k3, k4 = jax.random.split(key, 5)
    x = jax.random.normal(k0, (B, C, H, W), jnp.float32)

    # PyTorch nn.Linear layout: weight [out_features, in_features].
    w1 = jax.random.normal(k1, (Cr, C), jnp.float32) * 0.1     # fc1.weight
    b1 = jax.random.normal(k2, (Cr,), jnp.float32) * 0.1       # fc1.bias
    w2 = jax.random.normal(k3, (C, Cr), jnp.float32) * 0.1     # fc2.weight
    b2 = jax.random.normal(k4, (C,), jnp.float32) * 0.1        # fc2.bias

    out = jax.block_until_ready(se_block_pallas(x, w1, b1, w2, b2))
    ref = _reference(x, w1, b1, w2, b2)

    assert out.shape == (B, C, H, W)
    assert jnp.allclose(out, ref, atol=1e-3, rtol=1e-3), float(
        jnp.max(jnp.abs(out - ref)))

    print("KERNEL_OK")
</pallas_src>

<mosaic_0001>
module attributes {stable_mosaic.version = 11 : i64} {
  func.func @_se_block_kernel(%arg0: i32, %arg1: memref<1x32x256xf32, #tpu.memory_space<vmem>>, %arg2: memref<32x2xf32, #tpu.memory_space<vmem>>, %arg3: memref<1x2xf32, #tpu.memory_space<vmem>>, %arg4: memref<2x32xf32, #tpu.memory_space<vmem>>, %arg5: memref<1x32xf32, #tpu.memory_space<vmem>>, %arg6: memref<1x32x256xf32, #tpu.memory_space<vmem>>) attributes {dimension_semantics = [#tpu.dimension_semantics<parallel>], iteration_bounds = array<i64: 2>, scalar_prefetch = 0 : i64, scratch_operands = 0 : i64, tpu.core_type = #tpu.core_type<tc>, window_params = [{transform_indices = @transform_0, window_bounds = array<i64: 1, 32, 256>}, {pipeline_mode = #tpu.pipeline_mode<synchronous>, transform_indices = @transform_1, window_bounds = array<i64: 32, 2>}, {pipeline_mode = #tpu.pipeline_mode<synchronous>, transform_indices = @transform_2, window_bounds = array<i64: 1, 2>}, {pipeline_mode = #tpu.pipeline_mode<synchronous>, transform_indices = @transform_3, window_bounds = array<i64: 2, 32>}, {pipeline_mode = #tpu.pipeline_mode<synchronous>, transform_indices = @transform_4, window_bounds = array<i64: 1, 32>}, {transform_indices = @transform_5, window_bounds = array<i64: 1, 32, 256>}]} {
    %c0 = arith.constant 0 : index
    %c0_0 = arith.constant 0 : index
    %c0_1 = arith.constant 0 : index
    %0 = vector.load %arg1[%c0, %c0_0, %c0_1] : memref<1x32x256xf32, #tpu.memory_space<vmem>>, vector<1x32x256xf32>
    %cst = arith.constant dense<0.000000e+00> : vector<1x32xf32>
    %1 = vector.multi_reduction <add>, %0, %cst [2] : vector<1x32x256xf32> to vector<1x32xf32>
    %cst_2 = arith.constant 3.906250e-03 : f32
    %2 = vector.broadcast %cst_2 : f32 to vector<1x32xf32>
    %3 = arith.mulf %1, %2 : vector<1x32xf32>
    %c0_3 = arith.constant 0 : index
    %c0_4 = arith.constant 0 : index
    %4 = vector.load %arg2[%c0_3, %c0_4] : memref<32x2xf32, #tpu.memory_space<vmem>>, vector<32x2xf32>
    %cst_5 = arith.constant dense<0.000000e+00> : vector<1x2xf32>
    %5 = tpu.matmul %3, %4, %cst_5 {dimension_numbers = #tpu.dot_dimension_numbers<[1], [0], [0], [1], [0, 0, 1, 1], [], []>} : vector<1x32xf32>, vector<32x2xf32>, vector<1x2xf32> -> vector<1x2xf32>
    %c0_6 = arith.constant 0 : index
    %c0_7 = arith.constant 0 : index
    %6 = vector.load %arg3[%c0_6, %c0_7] : memref<1x2xf32, #tpu.memory_space<vmem>>, vector<1x2xf32>
    %7 = arith.addf %5, %6 : vector<1x2xf32>
    %cst_8 = arith.constant 0.000000e+00 : f32
    %8 = vector.broadcast %cst_8 : f32 to vector<1x2xf32>
    %9 = arith.maximumf %7, %8 : vector<1x2xf32>
    %c0_9 = arith.constant 0 : index
    %c0_10 = arith.constant 0 : index
    %10 = vector.load %arg4[%c0_9, %c0_10] : memref<2x32xf32, #tpu.memory_space<vmem>>, vector<2x32xf32>
    %cst_11 = arith.constant dense<0.000000e+00> : vector<1x32xf32>
    %11 = tpu.matmul %9, %10, %cst_11 {dimension_numbers = #tpu.dot_dimension_numbers<[1], [0], [0], [1], [0, 0, 1, 1], [], []>} : vector<1x2xf32>, vector<2x32xf32>, vector<1x32xf32> -> vector<1x32xf32>
    %c0_12 = arith.constant 0 : index
    %c0_13 = arith.constant 0 : index
    %12 = vector.load %arg5[%c0_12, %c0_13] : memref<1x32xf32, #tpu.memory_space<vmem>>, vector<1x32xf32>
    %13 = arith.addf %11, %12 : vector<1x32xf32>
    %14 = math.absf %13 : vector<1x32xf32>
    %cst_14 = arith.constant 0.000000e+00 : f32
    %15 = vector.broadcast %cst_14 : f32 to vector<1x32xf32>
    %16 = arith.subf %15, %14 : vector<1x32xf32>
    %17 = math.exp %16 : vector<1x32xf32>
    %cst_15 = arith.constant 0.000000e+00 : f32
    %18 = vector.broadcast %cst_15 : f32 to vector<1x32xf32>
    %19 = arith.cmpf oge, %13, %18 : vector<1x32xf32>
    %cst_16 = arith.constant 1.000000e+00 : f32
    %20 = vector.broadcast %cst_16 : f32 to vector<1x32xf32>
    %21 = arith.addf %20, %17 : vector<1x32xf32>
    %cst_17 = arith.constant 1.000000e+00 : f32
    %22 = vector.broadcast %cst_17 : f32 to vector<1x32xf32>
    %23 = arith.divf %22, %21 : vector<1x32xf32>
    %cst_18 = arith.constant 1.000000e+00 : f32
    %24 = vector.broadcast %cst_18 : f32 to vector<1x32xf32>
    %25 = arith.addf %24, %17 : vector<1x32xf32>
    %26 = arith.divf %17, %25 : vector<1x32xf32>
    %27 = arith.select %19, %23, %26 : vector<1x32xi1>, vector<1x32xf32>
    %28 = vector.shape_cast %27 : vector<1x32xf32> to vector<1x32x1xf32>
    %29 = vector.broadcast %28 : vector<1x32x1xf32> to vector<1x32x256xf32>
    %30 = arith.mulf %0, %29 : vector<1x32x256xf32>
    %c0_19 = arith.constant 0 : index
    %c0_20 = arith.constant 0 : index
    %c0_21 = arith.constant 0 : index
    %31 = vector.load %arg6[%c0_19, %c0_20, %c0_21] : memref<1x32x256xf32, #tpu.memory_space<vmem>>, vector<1x32x256xf32>
    tpu.vector_store %arg6[%c0_19, %c0_20, %c0_21], %30 {strides = array<i32>} : memref<1x32x256xf32, #tpu.memory_space<vmem>>, vector<1x32x256xf32>,
    return
  }
  func.func @transform_0(%arg0: i32) -> (i32, i32, i32) {
    %c0_i32 = arith.constant 0 : i32
    %c0_i32_0 = arith.constant 0 : i32
    %c0_i32_1 = arith.constant 0 : i32
    return %arg0, %c0_i32, %c0_i32_0 : i32, i32, i32
  }
  func.func @transform_1(%arg0: i32) -> (i32, i32) {
    %c0_i32 = arith.constant 0 : i32
    %c0_i32_0 = arith.constant 0 : i32
    %c0_i32_1 = arith.constant 0 : i32
    return %c0_i32, %c0_i32_0 : i32, i32
  }
  func.func @transform_2(%arg0: i32) -> (i32, i32) {
    %c0_i32 = arith.constant 0 : i32
    %c0_i32_0 = arith.constant 0 : i32
    %c0_i32_1 = arith.constant 0 : i32
    return %c0_i32, %c0_i32_0 : i32, i32
  }
  func.func @transform_3(%arg0: i32) -> (i32, i32) {
    %c0_i32 = arith.constant 0 : i32
    %c0_i32_0 = arith.constant 0 : i32
    %c0_i32_1 = arith.constant 0 : i32
    return %c0_i32, %c0_i32_0 : i32, i32
  }
  func.func @transform_4(%arg0: i32) -> (i32, i32) {
    %c0_i32 = arith.constant 0 : i32
    %c0_i32_0 = arith.constant 0 : i32
    %c0_i32_1 = arith.constant 0 : i32
    return %c0_i32, %c0_i32_0 : i32, i32
  }
  func.func @transform_5(%arg0: i32) -> (i32, i32, i32) {
    %c0_i32 = arith.constant 0 : i32
    %c0_i32_0 = arith.constant 0 : i32
    %c0_i32_1 = arith.constant 0 : i32
    return %arg0, %c0_i32, %c0_i32_0 : i32, i32, i32
  }
}

</mosaic_0001>

<bundles_post_ra>
// kernel: tpu_custom_call.1
= control target key start
LH: loop header
LB: loop body
LE: loop exit
PB: predicated region body
PF: predicated region fallthrough
CT: control target
= control target key end

     0   :  { %10 = vsyncpa [#allocation3], 0  ;;  %s1030_s0 = inlined_call_operand.hbm [shape: f32[2,32,256], index: 0, kind: input, shape index: {}]   ;;  %s1031_s1 = inlined_call_operand.vmem [shape: f32[32,2], index: 1, kind: input, shape index: {}]   ;;  %s1032_s2 = inlined_call_operand.vmem [shape: f32[1,2], index: 2, kind: input, shape index: {}]   ;;  %s1033_s3 = inlined_call_operand.vmem [shape: f32[2,32], index: 3, kind: input, shape index: {}]   ;;  %s1034_s4 = inlined_call_operand.vmem [shape: f32[1,32], index: 4, kind: input, shape index: {}]   ;;  %s1035_s5 = inlined_call_operand.hbm [shape: f32[2,32,256], index: 5, kind: output, shape index: {}]  }
   0x1   :  { %12 = vsyncpa [#allocation3 + $0x1], 0 }
   0x2   :  { %13 = vsyncpa [#allocation4], 0 }
   0x3   :  { %15 = vsyncpa [#allocation4 + $0x1], 0  ;;  %s819_s18 = smov 0   ;;  %s821_s19 = smov 0  }
   0x4   :  { %s823_s20 = smov 0   ;;  %s825_s21 = smov 0  }
   0x5 LB: > { %s840_s22 = sadd.s32 4294967295, %s779_s21   ;;  %s589_s23 = sadd.s32 4294967294, %s779_s21   ;;  %s779_s21 = sphi %s825_s21, %s1050_s21   ;;  %s775_s20 = sphi %s823_s20, %s1049_s20   ;;  %s771_s19 = sphi %s821_s19, %s1048_s19   ;;  %s767_s18 = sphi %s819_s18, %s1047_s18  }
   0x6   : > { %s844_s24 = sadd.s32 1, %s779_s21   ;;  %s28_s25 = sadd.s32 1, %s775_s20 }
   0x7   : > { %s25_s26 = ssub.s32 %s779_s21, %s844_s24  ;;  %p35_p0 = scmp.ne.s32.totalorder %s775_s20, %s771_s19 }
   0x8   : > { %p26_p1 = scmp.eq.s32.totalorder %s25_s26, 0  ;;  %p36_p2 = scmp.eq.s32.totalorder %s779_s21, 0 }
   0x9   : > { %p41_p3 = scmp.ne.s32.totalorder %s771_s19, %s767_s18  ;;  %p42_p4 = scmp.eq.s32.totalorder %s840_s22, 0 }
   0xa   : > { %s856_s27 = scalar_select %p26_p1, %s775_s20, %s28_s25  }
   0xb   : > { %p858_p5 = por %p36_p2, %p35_p0  ;;  %p862_p6 = por %p42_p4, %p41_p3 }
   0xc   : > { %p149_p7 = scmp.eq.s32.totalorder %s840_s22, 1  ;;  %p155_p8 = scmp.eq.s32.totalorder %s589_s23, 1 }
   0xd   : > { %s1039_s29 = scalar_select %p862_p6, 1, 0 }
   0xe   : > { %p643_p10 = scmp.lt.s32.totalorder %s779_s21, 2  ;;  %p869_p11 = por %p149_p7, %p35_p0 }
   0xf   : > { %p873_p12 = por %p155_p8, %p41_p3  ;;  %s187_s7 = sand.u32 1, %s775_s20  }
  0x10   : > { %s1040_s30 = scalar_select %p869_p11, 1, 0 }
  0x11   : > { %s1041_s6 = scalar_select %p873_p12, 1, 0 }
  0x12   : > { %s606_s8 = sshll.u32 %s779_s21, 10  ;;  %s592_s9 = sshll.u32 %s187_s7, 6 }
  0x13   : > { %s882_s12 = scalar_lea.hbm %s1030_s0, %s606_s8  ;;  %s191_s13 = scalar_lea.vmem [#allocation2], %s592_s9 }
  0x14   : > { %s198_s14 = sshll.u32 %s191_s13, 4  ;;  %p886_p13 = pnand %p643_p10, %p858_p5  ;;  %s890_s14 = int_to_ptr.vmem [resolvable:$true] %s198_s14 }
  0x15   : > { %s892_s16 = scalar_lea.sflag [#allocation3], %s187_s7  ;;  %s687_s17 = scalar_lea.hbm %s882_s12, 1024 }
  0x16   : > { %p688_p0 = scmp.ne.s32.totalorder %s882_s12, %s687_s17  ;;  %p689_p1 = pneg %p886_p13 }
  0x17   : > { %s692_s26 = scalar_lea.hbm %s1030_s0, 2048  ;;  %p693_p4 = scmp.lt.s32.totalorder %s882_s12, %s1030_s0 }
  0x18   : > { %p690_p2 = pnand %p689_p1, %p688_p0  ;;  %p694_p5 = scmp.lt.s32.totalorder %s692_s26, %s687_s17 }
  0x1a   : > { %p691_p3 = pneg %p690_p2  ;;  %p695_p7 = por %p694_p5, %p693_p4 }
  0x1c   : > { %p696_p8 = pnand %p695_p7, %p691_p3 }
  0x1e   : > { %699 = shalt.err (!%p696_p8)
}
  0x1f   : > { %s700_s7 = scalar_lea.vmem %s890_s14, 1024  ;;  %s781_s9 = smov [#allocation2]  }
  0x20   : > { %p701_p10 = scmp.ne.s32.totalorder %s890_s14, %s700_s7  ;;  %s705_s10 = sshll.u32 %s781_s9, 4  ;;  %s706_s10 = int_to_ptr.vmem [resolvable:$false] %s705_s10 }
  0x21   : > { %s707_s11 = scalar_lea.vmem %s706_s10, 2048  ;;  %p708_p2 = scmp.lt.s32.totalorder %s890_s14, %s706_s10 }
  0x22   : > { %p703_p9 = pnand %p701_p10, %p689_p1  ;;  %p709_p12 = scmp.lt.s32.totalorder %s707_s11, %s700_s7 }
  0x24   : > { %p704_p0 = pneg %p703_p9  ;;  %p710_p11 = por %p709_p12, %p708_p2 }
  0x26   : > { %p711_p6 = pnand %p710_p11, %p704_p0 }
  0x28   : > { %714 = shalt.err (!%p711_p6)
}
  0x29   : > { %s782_s13 = smov 256   ;;  %s783_s17 = smov 16  }
  0x2a   : > { %638 = dma.hbm_to_vmem [thread:$0]  (!%p886_p13), %s882_s12, 1024, %s890_s14, %s892_s16, %s782_s13, %s782_s13, %s783_s17  }
  0x2b   : > { %p595_p9 = scmp.ge.s32.totalorder %s779_s21, 1  ;;  %p206_p1 = scmp.lt.s32.totalorder %s779_s21, 3 }
  0x2d   : > { %p207_p3 = pnand %p595_p9, %p206_p1 }
  0x2e   : > { %s916_s23 = sand.u32 (!%p207_p3), 1, %s771_s19   ;;  %p1043_p6 = scmp.ne.s32.totalorder (!%p207_p3), %s1039_s29, 0 }
  0x2f   : > { %210 = sbr.rel (%p207_p3) target bundleno = 777 (0x309), region = 40  ;;  %s596_s25 = sshll.u32 (!%p207_p3), %s916_s23, 6 }
  0x30   : > { %s213_s26 = scalar_lea.sflag (!%p207_p3), [#allocation3], %s916_s23  ;;  %s216_s28 = scalar_lea.vmem (!%p207_p3), [#allocation2], %s596_s25 }
  0x34   : > { %758 = dma.done.wait (%p1043_p6), %s213_s26, 1024  }
  0x35   : > { %760 = vsyncadd (%p1043_p6), %s213_s26, 4294966272  ;;  %v926_v0 = vld [vmem:[%s216_s28] sm:$0xff]  ;;  %v928_v1 = vld [vmem:[%s216_s28 + $0x8] sm:$0xff]  ;;  %v784_v12 = vmov 0.0   ;;  %vm785_vm0 = vmmov 0   ;;  %v276_v17 = vlaneseq  ;;  %vm287_vm1 = vcmask 130112  }
  0x36   : > { %v930_v2 = vld [vmem:[%s216_s28 + $0x20] sm:$0xff]  ;;  %v251_v3 = vadd.f32 %v928_v1, %v926_v0  ;;  %v934_v4 = vld [vmem:[%s216_s28 + $0x28] sm:$0xff]  ;;  %v936_v5 = vld [vmem:[%s216_s28 + $0x10] sm:$0xff]  ;;  %615 = vmatprep.subr.mxu0 %v784_v12  ;;  %626 = vmatprep.subr.mxu1 %v784_v12  ;;  %vm294_vm2 = vcmask 195712   ;;  %vm301_vm3 = vcmask 261312   ;;  %vm303_vm4 = vcmask 261120  }
  0x37   : > { %v938_v6 = vld [vmem:[%s216_s28 + $0x18] sm:$0xff]  ;;  %v257_v7 = vadd.f32 %v934_v4, %v930_v2  ;;  %v942_v8 = vld [vmem:[%s216_s28 + $0x30] sm:$0xff]  ;;  %v268_v15 = vld [vmem:[%s1031_s1 + $0x8] sm:$0xff]  ;;  %623 = vmatprep.mubr.msk.f32.mxu0 %vm785_vm0, %v784_v12  ;;  %628 = vmatprep.mubr.msk.f32.mxu1 %vm785_vm0, %v784_v12  ;;  %v277_v18 = vand.u32 127, %v276_v17  ;;  %v279_v19 = vshrl.u32 %v276_v17, 7  ;;  %vm383_vm5 = vcmask 1041408  }
  0x38   : > { %v944_v9 = vld [vmem:[%s216_s28 + $0x38] sm:$0xff]  ;;  %252 = vadd.xlane.f32.xlu0 %v251_v3  ;;  %v254_v10 = vadd.f32 %v938_v6, %v936_v5  ;;  %v269_v14 = vld [vmem:[%s1031_s1 + $0x10] sm:$0xff]  ;;  %v267_v16 = vld [vmem:[%s1031_s1] sm:$0xff]  ;;  %vm379_vm6 = vcmask 15360   ;;  %s242_s29 = scalar_lea.vmem [#allocation5], %s596_s25  ;;  %s607_s14 = sshll.u32 %s840_s22, 10 }
  0x39   : > { %258 = vadd.xlane.f32.xlu1 %v257_v7  ;;  %v260_v11 = vadd.f32 %v944_v9, %v942_v8  ;;  %v270_v13 = vld [vmem:[%s1031_s1 + $0x18] sm:$0xff]  ;;  %v282_v20 = vadd.s32 4294967288, %v277_v18  ;;  %v289_v22 = vadd.s32 4294967280, %v277_v18  ;;  %v296_v23 = vadd.s32 4294967272, %v277_v18  ;;  %v377_v42 = vld [vmem:[%s1033_s3] sm:$0x3]  ;;  %s985_s16 = scalar_lea.hbm %s1035_s5, %s607_s14 }
  0x3a   : > { %616 = vmatpush3.msra.mxu0 %v270_v13  ;;  %v280_v25 = vsub.s32 %v277_v18, %v279_v19  ;;  %627 = vmatpush3.msk.msra.mxu1 %vm383_vm5, %v377_v42  ;;  %v271_v43 = vld [vmem:[%s1032_s2] sm:$0x1]  ;;  %v469_v58 = vsub.s32 0, %v279_v19  ;;  %s516_s12 = sshll.u32 %s242_s29, 4  ;;  %s503_s22 = scalar_lea.sflag [#allocation4], %s916_s23  ;;  %s980_s12 = int_to_ptr.vmem [resolvable:$true] %s516_s12 }
  0x3b   : > { %617 = vmatprep.subr.mxu0 %v784_v12  ;;  %v285_v27 = vsub.s32 %v282_v20, %v279_v19  ;;  %v292_v28 = vsub.s32 %v289_v22, %v279_v19  ;;  %v299_v31 = vsub.s32 %v296_v23, %v279_v19  ;;  %v378_v48 = vld [vmem:[%s1034_s4] sm:$0x1]  ;;  %s715_s8 = scalar_lea.vmem %s980_s12, 1024  ;;  %p1044_p12 = scmp.ne.s32.totalorder %s1040_s30, 0 }
  0x3c   : > { %255 = vadd.xlane.f32.xlu0 %v254_v10  ;;  %618 = vmatpush3.msra.mxu0 %v269_v14  ;;  %p716_p11 = scmp.ne.s32.totalorder %s980_s12, %s715_s8  ;;  %s786_s7 = smov [#allocation5]  }
  0x3d   : > { %261 = vadd.xlane.f32.xlu1 %v260_v11  ;;  %619 = vmatprep.subr.mxu0 %v784_v12  ;;  %s719_s9 = sshll.u32 %s786_s7, 4  ;;  %s720_s9 = int_to_ptr.vmem [resolvable:$false] %s719_s9 }
  0x3e   : > { %620 = vmatpush3.msra.mxu0 %v268_v15  ;;  %p717_p13 = pnand %p716_p11, %p1044_p12  ;;  %s721_s10 = scalar_lea.vmem %s720_s9, 2048 }
  0x3f   : > { %621 = vmatprep.subr.mxu0 %v784_v12  ;;  %p722_p5 = scmp.lt.s32.totalorder %s980_s12, %s720_s9  ;;  %p723_p7 = scmp.lt.s32.totalorder %s721_s10, %s715_s8 }
  0x40   : > { %622 = vmatpush3.msra.mxu0 %v267_v16  ;;  %p718_p4 = pneg %p717_p13 }
  0x41   : > { %p724_p8 = por %p723_p7, %p722_p5 }
  0x43   : > { %p725_p10 = pnand %p724_p8, %p718_p4 }
  0xc1   : > { %v253_v21 = vpop.xlane.xlu0 %252 }
  0xc2   : > { %v259_v24 = vpop.xlane.xlu1 %258  ;;  %v263_v26 = vmul.f32 0.00390625, %v253_v21 }
  0xc3   : > { %v265_v29 = vmul.f32 0.00390625, %v259_v24 }
  0xc4   : > { %v281_v35 = vrot.slane %v263_v26, %v280_v25 }
  0xc5   : > { %v256_v30 = vpop.xlane.xlu0 %255  ;;  %v293_v37 = vrot.slane %v265_v29, %v292_v28 }
  0xc6   : > { %v264_v32 = vmul.f32 0.00390625, %v256_v30  ;;  %v262_v33 = vpop.xlane.xlu1 %261 }
  0xc7   : > { %v266_v34 = vmul.f32 0.00390625, %v262_v33 }
  0xc8   : > { %v286_v36 = vrot.slane %v264_v32, %v285_v27 }
  0xc9   : > { %v300_v38 = vrot.slane %v266_v34, %v299_v31 }
  0xca   : > { %v288_v39 = vsel %vm287_vm1, %v286_v36, %v281_v35 }
  0xcb   : > { %v295_v40 = vsel %vm294_vm2, %v293_v37, %v288_v39 }
  0xcc   : > { %v302_v41 = vsel %vm301_vm3, %v300_v38, %v295_v40 }
  0xcd   : > { %624 = vmatmul.mubr.msk.f32.vlgmr.msra.gmra.mxu0 %vm303_vm4, %v302_v41 }
 0x18d   : > { %v372_v44 = vpop.f32.mrf.mxu0 }
 0x18e   : > { %v373_v45 = vadd.f32 %v372_v44, %v271_v43 }
 0x18f   : > { %v625_v46 = vpop.f32.mrf.mxu0 }
 0x190   : > { %v376_v47 = vmax.f32 %v373_v45, 0.0 }
 0x192   : > { %629 = vmatmul.mubr.msk.f32.vlgmr.msra.gmra.mxu1 %vm379_vm6, %v376_v47 }
 0x252   : > { %v453_v49 = vpop.f32.mrf.mxu1 }
 0x253   : > { %v454_v50 = vadd.f32 %v453_v49, %v378_v48 }
 0x254   : > { %v630_v51 = vpop.f32.mrf.mxu1 }
 0x255   : > { %v457_v52 = vand.u32 2147483647, %v454_v50  ;;  %vm461_vm7 = vcmp.ge.f32.partialorder %v454_v50, 0.0 }
 0x257   : > { %v458_v53 = vsub.f32 0.0, %v457_v52 }
 0x259   : > { %v459_v54 = vmul.f32 1.442695, %v458_v53 }
 0x25b   : > { %683 = vpow2.f32 %v459_v54 }
 0x268   : > { %v684_v55 = vpop.eup %683 }
 0x269   : > { %v462_v56 = vadd.f32 1.0, %v684_v55 }
 0x26b   : > { %685 = vrcp.f32 %v462_v56 }
 0x278   : > { %v686_v57 = vpop.eup %685 }
 0x279   : > { %v465_v59 = vmul.f32 %v686_v57, %v684_v55 }
 0x27b   : > { %v466_v60 = vsel %vm461_vm7, %v686_v57, %v465_v59 }
 0x27c   : > { %v470_v61 = vrot.slane %v466_v60, %v469_v58 }
 0x27e   : > { %476 = vbcast.lane.b32.xlu1 %v470_v61, 264  ;;  %472 = vbcast.lane.b32.xlu0 %v470_v61, 256 }
 0x282   : > { %480 = vbcast.lane.b32.xlu1 %v470_v61, 272 }
 0x286   : > { %484 = vbcast.lane.b32.xlu1 %v470_v61, 280 }
 0x2f0   : > { %v477_v62 = vpop.permute.xlu1 %476  ;;  %v473_v63 = vpop.permute.xlu0 %472 }
 0x2f1   : > { %v488_v3 = vmul.f32 %v477_v62, %v936_v5  ;;  %v489_v7 = vmul.f32 %v477_v62, %v938_v6  ;;  %v486_v10 = vmul.f32 %v473_v63, %v926_v0  ;;  %v487_v11 = vmul.f32 %v473_v63, %v928_v1 }
 0x2f3   : > { %496 = vst [vmem:[%s242_s29 + $0x10] sm:$0xff] %v488_v3  ;;  %497 = vst [vmem:[%s242_s29 + $0x18] sm:$0xff] %v489_v7 }
 0x2f4   : > { %494 = vst [vmem:[%s242_s29] sm:$0xff] %v486_v10  ;;  %495 = vst [vmem:[%s242_s29 + $0x8] sm:$0xff] %v487_v11  ;;  %v481_v12 = vpop.permute.xlu1 %480 }
 0x2f5   : > { %v490_v13 = vmul.f32 %v481_v12, %v930_v2  ;;  %v491_v5 = vmul.f32 %v481_v12, %v934_v4 }
 0x2f7   : > { %498 = vst [vmem:[%s242_s29 + $0x20] sm:$0xff] %v490_v13  ;;  %499 = vst [vmem:[%s242_s29 + $0x28] sm:$0xff] %v491_v5 }
 0x2f8   : > { %v485_v0 = vpop.permute.xlu1 %484 }
 0x2f9   : > { %v492_v1 = vmul.f32 %v485_v0, %v942_v8  ;;  %v493_v2 = vmul.f32 %v485_v0, %v944_v9 }
 0x2fb   : > { %500 = vst [vmem:[%s242_s29 + $0x30] sm:$0xff] %v492_v1  ;;  %501 = vst [vmem:[%s242_s29 + $0x38] sm:$0xff] %v493_v2 }
 0x2fc   : > { %728 = shalt.err (!%p725_p10)
}
 0x2fd   : > { %s729_s11 = scalar_lea.hbm %s985_s16, 1024  ;;  %s733_s26 = scalar_lea.hbm %s1035_s5, 2048 }
 0x2fe   : > { %p730_p0 = scmp.ne.s32.totalorder %s985_s16, %s729_s11  ;;  %p734_p1 = scmp.lt.s32.totalorder %s985_s16, %s1035_s5 }
 0x2ff   : > { %p735_p3 = scmp.lt.s32.totalorder %s733_s26, %s729_s11 }
 0x300   : > { %p731_p2 = pnand %p730_p0, %p1044_p12 }
 0x301   : > { %p736_p6 = por %p735_p3, %p734_p1 }
 0x302   : > { %p732_p9 = pneg %p731_p2 }
 0x304   : > { %p737_p11 = pnand %p736_p6, %p732_p9 }
 0x306   : > { %740 = shalt.err (!%p737_p11)
}
 0x307   : > { %s787_s14 = smov 256   ;;  %s788_s25 = smov 16  }
 0x308   : > { %633 = dma.vmem_to_hbm [thread:$0]  (%p1044_p12), %s980_s12, 1024, %s985_s16, %s503_s22, %s787_s14, %s787_s14, %s788_s25  }
 0x309 PF: > { %s531_s15 = sand.u32 1, %s767_s18   ;;  %p1045_p13 = scmp.ne.s32.totalorder %s1041_s6, 0 }
 0x30a   : > { %p1046_p4 = scmp.ge.s32.totalorder %s779_s21, 2  ;;  %s532_s8 = scalar_lea.sflag [#allocation4], %s531_s15 }
 0x30c   : > { %p640_p5 = pnand %p1046_p4, %p1045_p13 }
 0x30e   : > { %p641_p7 = pneg %p640_p5 }
 0x310   : > { %762 = dma.done.wait (%p641_p7), %s532_s8, 1024  }
 0x311   : > { %764 = vsyncadd (%p641_p7), %s532_s8, 4294966272  ;;  %p18_p8 = scmp.ge.s32.totalorder %s844_s24, 4   ;;  %s1047_s18 = smov %s771_s19 }
 0x312   : > { %s1048_s19 = smov %s775_s20  ;;  %s1049_s20 = smov %s856_s27 }
 0x313   : > { %s1050_s21 = smov %s844_s24  ;;  %20 = sbr.rel (!%p18_p8) target bundleno = 5 (0x5), region = 85 }
 0x318   :  { %537 = vsyncpa [#allocation3], 1 }
 0x319   :  { %539 = vsyncpa [#allocation3 + $0x1], 1 }
 0x31a   :  { %540 = vsyncpa [#allocation4], 1 }
 0x31b   :  { %542 = vsyncpa [#allocation4 + $0x1], 1 }

</bundles_post_ra>
